<compile_context>
chip_gen: v7x
topology: tpu7x:2x2x1
jax: 0.10.0
libtpu: 0.0.40
codegen_flags: <defaults>
</compile_context>

<pallas_src>
import functools
import numpy as np
import jax
import jax.numpy as jnp
from jax.experimental import pallas as pl
from jax.experimental.pallas import tpu as pltpu


# ----------------------------- parameter setup (plain JAX / numpy glue) -----
def dct_mat(size: int) -> np.ndarray:
    m = [[(np.sqrt(1.0 / size) if i == 0 else np.sqrt(2.0 / size))
          * np.cos((j + 0.5) * np.pi * i / size)
          for j in range(size)] for i in range(size)]
    return np.asarray(m, dtype=np.float32)


def generate_filter(start: int, end: int, size: int) -> np.ndarray:
    return np.asarray(
        [[0.0 if (i + j > end or i + j <= start) else 1.0 for j in range(size)]
         for i in range(size)],
        dtype=np.float32,
    )


def make_fad_params(size: int, key):
    """Deterministically build DCT matrices and the 4 effective filters."""
    d = jnp.asarray(dct_mat(size))          # (S, S)
    dt = d.T                                # (S, S)

    bands = [
        (0, size // 16),          # low
        (size // 16, size // 8),  # middle
        (size // 8, size),        # high
        (0, size * 2),            # all
    ]
    keys = jax.random.split(key, 4)
    filts = []
    for (start, end), k in zip(bands, keys):
        base = jnp.asarray(generate_filter(start, end, size))        # fixed
        learnable = 0.1 * jax.random.normal(k, (size, size), jnp.float32)
        # norm_sigma(x) = 2*sigmoid(x) - 1
        filt = base + (2.0 * jax.nn.sigmoid(learnable) - 1.0)
        filts.append(filt)
    filt_all = jnp.stack(filts, axis=0)     # (4, S, S)
    return d, dt, filt_all


def build_fused_weight(dct, dct_t, filt):
    """Fold D / filters / D^T into one (S*S, 4*S*S) right-multiply operator.

    Row-major vec identity: vec(A @ X @ B) = (A (x) B^T) vec(X).
      forward DCT  : D   @ x  @ D^T -> K_fwd = kron(D,   D)
      inverse DCT  : D^T @ xp @ D   -> K_inv = kron(D^T, D^T)
      band f       : M_f = K_inv @ diag(filt_f) @ K_fwd,  y_row = x_row @ M_f^T
    Called ONCE at module init (hoisted out of the jitted forward).
    """
    s = dct.shape[0]
    s2 = s * s
    k_fwd = jnp.kron(dct, dct)              # (S2, S2)
    k_inv = jnp.kron(dct_t, dct_t)          # (S2, S2)
    ws = []
    for f in range(filt.shape[0]):
        m_f = k_inv @ (filt[f].reshape(s2, 1) * k_fwd)   # (S2, S2)
        ws.append(m_f.T)
    return jnp.concatenate(ws, axis=1)      # (S2, 4*S2) bands: [low, mid, high, all]


# ----------------------------- Pallas kernel --------------------------------
def fad_kernel(w_ref, x_ref, low_ref, mid_ref, high_ref, all_ref):
    # w_ref   : (S2, 4*S2)  fused band operator (constant across the grid)
    # x_ref   : (TM, S2)    TM flattened (n, c) pixel-blocks, lane-dense
    # *_ref   : (TM, S2)    one output per band, lane-dense (256 lanes)
    res = jnp.dot(x_ref[...], w_ref[...],
                  preferred_element_type=jnp.float32)        # (TM, 4*S2)
    s2 = x_ref.shape[-1]
    # 256-lane-aligned static slices of res -> zero-cost vreg views.
    low_ref[...] = res[:, 0 * s2:1 * s2].astype(low_ref.dtype)
    mid_ref[...] = res[:, 1 * s2:2 * s2].astype(mid_ref.dtype)
    high_ref[...] = res[:, 2 * s2:3 * s2].astype(high_ref.dtype)
    all_ref[...] = res[:, 3 * s2:4 * s2].astype(all_ref.dtype)


def _round_up(x: int, m: int) -> int:
    return ((x + m - 1) // m) * m


@functools.partial(jax.jit, static_argnames=("tm_cap", "compute_dtype"))
def fad_head_forward(x, w, *, tm_cap=512, compute_dtype=jnp.float32):
    """x: (N, C, S, S) f32, w: (S*S, 4*S*S) fused operator.

    Returns (out, low, mid, high) matching torch FAD_Head.forward.
    """
    n, c, s, _ = x.shape
    s2 = s * s
    nc = n * c

    # Flatten N*C into the MXU M dimension (free metadata reshape).
    x_flat = x.reshape(nc, s2)

    # Row tile: multiple of 8 (sublane rule), capped for VMEM (v5e default
    # scoped 16 MiB is the tightest budget at f32 / TM=512).
    tm = min(_round_up(nc, 8), _round_up(tm_cap, 8))
    mp = _round_up(nc, tm)
    # v7x has 2 TensorCores: prefer >=2 grid steps when each half still keeps
    # MXU M >= 256.
    if mp // tm == 1 and tm >= 512 and tm % 16 == 0:
        tm //= 2
    if mp != nc:
        x_flat = jnp.pad(x_flat, ((0, mp - nc), (0, 0)))

    itemsize = np.dtype(compute_dtype).itemsize
    x_k = x_flat.astype(compute_dtype)
    w_k = w.astype(compute_dtype)

    # Scoped-VMEM budget: W (x2 buffers) + x block (x2) + 4 f32 output blocks
    # (x2) + the (TM, 4*S2) f32 result intermediate, plus headroom.
    vmem_bytes = (2 * s2 * 4 * s2 * itemsize
                  + 2 * tm * s2 * itemsize
                  + 2 * 4 * tm * s2 * 4
                  + tm * 4 * s2 * 4)
    vmem_limit = int(min(max(int(vmem_bytes * 1.5), 16 * 1024 * 1024),
                         56 * 1024 * 1024))

    cost = pl.CostEstimate(
        flops=2 * mp * s2 * 4 * s2,
        transcendentals=0,
        bytes_accessed=(mp * s2 * itemsize            # x
                        + s2 * 4 * s2 * itemsize      # W
                        + 4 * mp * s2 * 4),           # 4 band outputs (f32)
    )

    bands = pl.pallas_call(
        fad_kernel,
        out_shape=tuple(jax.ShapeDtypeStruct((mp, s2), jnp.float32)
                        for _ in range(4)),
        grid_spec=pltpu.PrefetchScalarGridSpec(
            num_scalar_prefetch=0,
            grid=(mp // tm,),
            in_specs=[
                # fused weight: full array, constant index -> fetched once
                pl.BlockSpec((s2, 4 * s2), lambda m: (0, 0)),
                # input row tile: (TM, 256) lane-dense, contiguous DMA
                pl.BlockSpec((tm, s2), lambda m: (m, 0)),
            ],
            out_specs=[pl.BlockSpec((tm, s2), lambda m: (m, 0))
                       for _ in range(4)],
        ),
        compiler_params=pltpu.CompilerParams(
            dimension_semantics=("parallel",),
            vmem_limit_bytes=vmem_limit),
        cost_estimate=cost,
    )(w_k, x_k)

    def unflatten(b):
        if mp != nc:
            b = b[:nc]
        return b.reshape(n, c, s, s)      # free metadata reshape when no pad

    low, mid, high, allb = (unflatten(b) for b in bands)
    # torch: out = cat([low_y, mid_y, high_y, all_y], dim=1) -> (N, 4C, S, S)
    out = jnp.concatenate([low, mid, high, allb], axis=1)
    return out, low, mid, high


# ----------------------------- pure-JAX reference (for verification) --------
def fad_head_reference(x, dct, dct_t, filt):
    x_freq = jnp.matmul(dct, jnp.matmul(x, dct_t))    # D @ x @ D^T (broadcast)
    ys = []
    for i in range(4):
        xp = x_freq * filt[i]
        ys.append(jnp.matmul(dct_t, jnp.matmul(xp, dct)))
    out = jnp.concatenate(ys, axis=1)
    return out, ys[0], ys[1], ys[2]


# ----------------------------- main ------------------------------------------
if __name__ == "__main__":
    SIZE = 16           # spatial size S (module is built for square S x S input)
    N, C = 2, 4         # small example shapes

    key = jax.random.PRNGKey(0)
    k_param, k_x = jax.random.split(key)

    dct, dct_t, filt = make_fad_params(SIZE, k_param)
    # Fused weight is built once at "module init", outside the jitted forward.
    w = jax.block_until_ready(build_fused_weight(dct, dct_t, filt))

    x = jax.random.normal(k_x, (N, C, SIZE, SIZE), jnp.float32)

    out, low, mid, high = fad_head_forward(x, w)
    jax.block_until_ready(out)

    # correctness check against plain-JAX reference (original small-matmul form)
    out_r, low_r, mid_r, high_r = fad_head_reference(x, dct, dct_t, filt)
    assert out.shape == (N, 4 * C, SIZE, SIZE)
    assert low.shape == mid.shape == high.shape == (N, C, SIZE, SIZE)
    np.testing.assert_allclose(np.asarray(out), np.asarray(out_r), atol=2e-4, rtol=2e-4)
    np.testing.assert_allclose(np.asarray(low), np.asarray(low_r), atol=2e-4, rtol=2e-4)
    np.testing.assert_allclose(np.asarray(mid), np.asarray(mid_r), atol=2e-4, rtol=2e-4)
    np.testing.assert_allclose(np.asarray(high), np.asarray(high_r), atol=2e-4, rtol=2e-4)

    print("KERNEL_OK")
</pallas_src>

<mosaic_0001>
module attributes {stable_mosaic.version = 11 : i64} {
  func.func @fad_kernel(%arg0: i32, %arg1: memref<256x1024xf32, #tpu.memory_space<vmem>>, %arg2: memref<8x256xf32, #tpu.memory_space<vmem>>, %arg3: memref<8x256xf32, #tpu.memory_space<vmem>>, %arg4: memref<8x256xf32, #tpu.memory_space<vmem>>, %arg5: memref<8x256xf32, #tpu.memory_space<vmem>>, %arg6: memref<8x256xf32, #tpu.memory_space<vmem>>) attributes {dimension_semantics = [#tpu.dimension_semantics<parallel>], iteration_bounds = array<i64: 1>, scalar_prefetch = 0 : i64, scratch_operands = 0 : i64, tpu.core_type = #tpu.core_type<tc>, window_params = [{pipeline_mode = #tpu.pipeline_mode<synchronous>, transform_indices = @transform_0, window_bounds = array<i64: 256, 1024>}, {transform_indices = @transform_1, window_bounds = array<i64: 8, 256>}, {transform_indices = @transform_2, window_bounds = array<i64: 8, 256>}, {transform_indices = @transform_3, window_bounds = array<i64: 8, 256>}, {transform_indices = @transform_4, window_bounds = array<i64: 8, 256>}, {transform_indices = @transform_5, window_bounds = array<i64: 8, 256>}]} {
    %c0 = arith.constant 0 : index
    %c0_0 = arith.constant 0 : index
    %0 = vector.load %arg2[%c0, %c0_0] : memref<8x256xf32, #tpu.memory_space<vmem>>, vector<8x256xf32>
    %c0_1 = arith.constant 0 : index
    %c0_2 = arith.constant 0 : index
    %1 = vector.load %arg1[%c0_1, %c0_2] : memref<256x1024xf32, #tpu.memory_space<vmem>>, vector<256x1024xf32>
    %cst = arith.constant dense<0.000000e+00> : vector<8x1024xf32>
    %2 = tpu.matmul %0, %1, %cst {dimension_numbers = #tpu.dot_dimension_numbers<[1], [0], [0], [1], [0, 0, 1, 1], [], []>} : vector<8x256xf32>, vector<256x1024xf32>, vector<8x1024xf32> -> vector<8x1024xf32>
    %3 = vector.extract_strided_slice %2 {offsets = [0, 0], sizes = [8, 256], strides = [1, 1]} : vector<8x1024xf32> to vector<8x256xf32>
    %c0_3 = arith.constant 0 : index
    %c0_4 = arith.constant 0 : index
    %4 = vector.load %arg3[%c0_3, %c0_4] : memref<8x256xf32, #tpu.memory_space<vmem>>, vector<8x256xf32>
    tpu.vector_store %arg3[%c0_3, %c0_4], %3 {strides = array<i32>} : memref<8x256xf32, #tpu.memory_space<vmem>>, vector<8x256xf32>,
    %5 = vector.extract_strided_slice %2 {offsets = [0, 256], sizes = [8, 256], strides = [1, 1]} : vector<8x1024xf32> to vector<8x256xf32>
    %c0_5 = arith.constant 0 : index
    %c0_6 = arith.constant 0 : index
    %6 = vector.load %arg4[%c0_5, %c0_6] : memref<8x256xf32, #tpu.memory_space<vmem>>, vector<8x256xf32>
    tpu.vector_store %arg4[%c0_5, %c0_6], %5 {strides = array<i32>} : memref<8x256xf32, #tpu.memory_space<vmem>>, vector<8x256xf32>,
    %7 = vector.extract_strided_slice %2 {offsets = [0, 512], sizes = [8, 256], strides = [1, 1]} : vector<8x1024xf32> to vector<8x256xf32>
    %c0_7 = arith.constant 0 : index
    %c0_8 = arith.constant 0 : index
    %8 = vector.load %arg5[%c0_7, %c0_8] : memref<8x256xf32, #tpu.memory_space<vmem>>, vector<8x256xf32>
    tpu.vector_store %arg5[%c0_7, %c0_8], %7 {strides = array<i32>} : memref<8x256xf32, #tpu.memory_space<vmem>>, vector<8x256xf32>,
    %9 = vector.extract_strided_slice %2 {offsets = [0, 768], sizes = [8, 256], strides = [1, 1]} : vector<8x1024xf32> to vector<8x256xf32>
    %c0_9 = arith.constant 0 : index
    %c0_10 = arith.constant 0 : index
    %10 = vector.load %arg6[%c0_9, %c0_10] : memref<8x256xf32, #tpu.memory_space<vmem>>, vector<8x256xf32>
    tpu.vector_store %arg6[%c0_9, %c0_10], %9 {strides = array<i32>} : memref<8x256xf32, #tpu.memory_space<vmem>>, vector<8x256xf32>,
    return
  }
  func.func @transform_0(%arg0: i32) -> (i32, i32) {
    %c0_i32 = arith.constant 0 : i32
    %c0_i32_0 = arith.constant 0 : i32
    %c0_i32_1 = arith.constant 0 : i32
    return %c0_i32, %c0_i32_0 : i32, i32
  }
  func.func @transform_1(%arg0: i32) -> (i32, i32) {
    %c0_i32 = arith.constant 0 : i32
    %c0_i32_0 = arith.constant 0 : i32
    return %arg0, %c0_i32 : i32, i32
  }
  func.func @transform_2(%arg0: i32) -> (i32, i32) {
    %c0_i32 = arith.constant 0 : i32
    %c0_i32_0 = arith.constant 0 : i32
    return %arg0, %c0_i32 : i32, i32
  }
  func.func @transform_3(%arg0: i32) -> (i32, i32) {
    %c0_i32 = arith.constant 0 : i32
    %c0_i32_0 = arith.constant 0 : i32
    return %arg0, %c0_i32 : i32, i32
  }
  func.func @transform_4(%arg0: i32) -> (i32, i32) {
    %c0_i32 = arith.constant 0 : i32
    %c0_i32_0 = arith.constant 0 : i32
    return %arg0, %c0_i32 : i32, i32
  }
  func.func @transform_5(%arg0: i32) -> (i32, i32) {
    %c0_i32 = arith.constant 0 : i32
    %c0_i32_0 = arith.constant 0 : i32
    return %arg0, %c0_i32 : i32, i32
  }
}

</mosaic_0001>

<bundles_post_ra>
// kernel: fad_head_forward.1
= control target key start
LH: loop header
LB: loop body
LE: loop exit
PB: predicated region body
PF: predicated region fallthrough
CT: control target
= control target key end

     0   :  { %11 = vsyncpa [#allocation3], 0  ;;  %s879_s18 = smov [#allocation2]   ;;  %s966_s0 = inlined_call_operand.hbm [shape: f32[256,1024], index: 0, kind: input, shape index: {}]   ;;  %s967_s1 = inlined_call_operand.vmem [shape: f32[8,256], index: 1, kind: input, shape index: {}]   ;;  %s968_s2 = inlined_call_operand.vmem [shape: f32[8,256], index: 2, kind: output, shape index: {0}]   ;;  %s969_s3 = inlined_call_operand.vmem [shape: f32[8,256], index: 3, kind: output, shape index: {1}]   ;;  %s970_s4 = inlined_call_operand.vmem [shape: f32[8,256], index: 4, kind: output, shape index: {2}]   ;;  %s971_s5 = inlined_call_operand.vmem [shape: f32[8,256], index: 5, kind: output, shape index: {3}]  }
   0x1   :  { %s17_s19 = sshll.u32 %s879_s18, 4  ;;  %s855_s22 = scalar_lea.hbm %s966_s0, 32768  ;;  %s18_s19 = int_to_ptr.vmem [resolvable:$true] %s17_s19 }
   0x2   :  { %p856_p0 = scmp.ne.s32.totalorder %s966_s0, %s855_s22  ;;  %p859_p1 = scmp.lt.u32.totalorder %s855_s22, %s966_s0 }
   0x4   :  { %p861_p2 = pnand %p859_p1, %p856_p0 }
   0x6   :  { %864 = shalt.err (!%p861_p2)
}
   0x7   :  { %s865_s27 = scalar_lea.vmem %s18_s19, 32768  ;;  %p870_p4 = scmp.lt.s32.totalorder %s18_s19, %s18_s19 }
   0x8   :  { %p866_p3 = scmp.ne.s32.totalorder %s18_s19, %s865_s27  ;;  %p871_p5 = scmp.lt.s32.totalorder %s865_s27, %s865_s27 }
   0xa   :  { %p872_p6 = por %p871_p5, %p870_p4 }
   0xc   :  { %p873_p7 = pnand %p872_p6, %p866_p3 }
   0xe   :  { %876 = shalt.err (!%p873_p7)
}
   0xf   :  { %s880_s28 = smov 1024   ;;  %s881_s29 = smov 64  }
  0x10   :  { %23 = dma.hbm_to_vmem [thread:$0]  %s966_s0, 32768, %s18_s19, [#allocation3], %s880_s28, %s880_s28, %s881_s29  }
  0x11   :  { %877 = dma.done.wait [#allocation3], 32768  }
  0x12   :  { %878 = vsyncadd [#allocation3], 4294934528  ;;  %v32_v0 = vld [vmem:[#allocation2 + $0x8] sm:$0xff]  ;;  %v34_v2 = vld [vmem:[#allocation2 + $0x18] sm:$0xff] }
  0x13   :  { %v40_v1 = vld [vmem:[#allocation2 + $0x48] sm:$0xff]  ;;  %v42_v4 = vld [vmem:[#allocation2 + $0x58] sm:$0xff]  ;;  %v31_v5 = vld [vmem:[#allocation2] sm:$0xff] }
  0x14   :  { %v596_v3 = vpack.c.bf16 %v40_v1, %v32_v0  ;;  %v39_v6 = vld [vmem:[#allocation2 + $0x40] sm:$0xff]  ;;  %v660_v7 = vpack.c.bf16 %v42_v4, %v34_v2  ;;  %v33_v9 = vld [vmem:[#allocation2 + $0x10] sm:$0xff]  ;;  %v48_v11 = vld [vmem:[#allocation2 + $0x88] sm:$0xff] }
  0x15   :  { %v598_v8 = vpack.c.bf16 %v39_v6, %v31_v5  ;;  %v41_v10 = vld [vmem:[#allocation2 + $0x50] sm:$0xff]  ;;  %v56_v13 = vld [vmem:[#allocation2 + $0xc8] sm:$0xff]  ;;  %v50_v14 = vld [vmem:[#allocation2 + $0x98] sm:$0xff] }
  0x16   :  { %597 = vmatprep.subr.bf16.mxu0 %v596_v3  ;;  %v662_v12 = vpack.c.bf16 %v41_v10, %v33_v9  ;;  %v58_v15 = vld [vmem:[#allocation2 + $0xd8] sm:$0xff]  ;;  %661 = vmatprep.subr.bf16.mxu1 %v660_v7  ;;  %v600_v16 = vpack.c.bf16 %v56_v13, %v48_v11  ;;  %v47_v18 = vld [vmem:[#allocation2 + $0x80] sm:$0xff]  ;;  %v49_v20 = vld [vmem:[#allocation2 + $0x90] sm:$0xff] }
  0x17   :  { %599 = vmatpush1.bf16.msra.mxu0 %v598_v8  ;;  %v664_v17 = vpack.c.bf16 %v58_v15, %v50_v14  ;;  %v55_v19 = vld [vmem:[#allocation2 + $0xc0] sm:$0xff]  ;;  %v57_v22 = vld [vmem:[#allocation2 + $0xd0] sm:$0xff]  ;;  %v64_v23 = vld [vmem:[#allocation2 + $0x108] sm:$0xff] }
  0x18   :  { %663 = vmatpush1.bf16.msra.mxu1 %v662_v12  ;;  %v602_v21 = vpack.c.bf16 %v55_v19, %v47_v18  ;;  %v72_v24 = vld [vmem:[#allocation2 + $0x148] sm:$0xff]  ;;  %601 = vmatprep.subr.bf16.mxu0 %v600_v16  ;;  %v666_v25 = vpack.c.bf16 %v57_v22, %v49_v20  ;;  %v66_v27 = vld [vmem:[#allocation2 + $0x118] sm:$0xff]  ;;  %v63_v29 = vld [vmem:[#allocation2 + $0x100] sm:$0xff] }
  0x19   :  { %665 = vmatprep.subr.bf16.mxu1 %v664_v17  ;;  %v604_v26 = vpack.c.bf16 %v72_v24, %v64_v23  ;;  %v74_v28 = vld [vmem:[#allocation2 + $0x158] sm:$0xff]  ;;  %v71_v31 = vld [vmem:[#allocation2 + $0x140] sm:$0xff]  ;;  %v65_v32 = vld [vmem:[#allocation2 + $0x110] sm:$0xff] }
  0x1a   :  { %v668_v30 = vpack.c.bf16 %v74_v28, %v66_v27  ;;  %v73_v33 = vld [vmem:[#allocation2 + $0x150] sm:$0xff]  ;;  %v606_v34 = vpack.c.bf16 %v71_v31, %v63_v29  ;;  %v80_v35 = vld [vmem:[#allocation2 + $0x188] sm:$0xff]  ;;  %v82_v37 = vld [vmem:[#allocation2 + $0x198] sm:$0xff] }
  0x1b   :  { %603 = vmatpush1.bf16.msra.mxu0 %v602_v21  ;;  %v88_v36 = vld [vmem:[#allocation2 + $0x1c8] sm:$0xff]  ;;  %v670_v38 = vpack.c.bf16 %v73_v33, %v65_v32  ;;  %v90_v40 = vld [vmem:[#allocation2 + $0x1d8] sm:$0xff]  ;;  %v79_v41 = vld [vmem:[#allocation2 + $0x180] sm:$0xff] }
  0x1c   :  { %667 = vmatpush1.bf16.msra.mxu1 %v666_v25  ;;  %605 = vmatprep.subr.bf16.mxu0 %v604_v26  ;;  %v608_v39 = vpack.c.bf16 %v88_v36, %v80_v35  ;;  %v87_v42 = vld [vmem:[#allocation2 + $0x1c0] sm:$0xff]  ;;  %v672_v43 = vpack.c.bf16 %v90_v40, %v82_v37  ;;  %v81_v44 = vld [vmem:[#allocation2 + $0x190] sm:$0xff]  ;;  %v96_v46 = vld [vmem:[#allocation2 + $0x208] sm:$0xff] }
  0x1d   :  { %669 = vmatprep.subr.bf16.mxu1 %v668_v30  ;;  %v89_v45 = vld [vmem:[#allocation2 + $0x1d0] sm:$0xff]  ;;  %v104_v47 = vld [vmem:[#allocation2 + $0x248] sm:$0xff]  ;;  %v98_v48 = vld [vmem:[#allocation2 + $0x218] sm:$0xff]  ;;  %v610_v50 = vpack.c.bf16 %v87_v42, %v79_v41 }
  0x1e   :  { %v106_v49 = vld [vmem:[#allocation2 + $0x258] sm:$0xff]  ;;  %v674_v51 = vpack.c.bf16 %v89_v45, %v81_v44  ;;  %v612_v52 = vpack.c.bf16 %v104_v47, %v96_v46  ;;  %v95_v53 = vld [vmem:[#allocation2 + $0x200] sm:$0xff]  ;;  %v97_v55 = vld [vmem:[#allocation2 + $0x210] sm:$0xff] }
  0x1f   :  { %607 = vmatpush1.bf16.msra.mxu0 %v606_v34  ;;  %v103_v54 = vld [vmem:[#allocation2 + $0x240] sm:$0xff]  ;;  %v676_v56 = vpack.c.bf16 %v106_v49, %v98_v48  ;;  %v105_v57 = vld [vmem:[#allocation2 + $0x250] sm:$0xff]  ;;  %v112_v58 = vld [vmem:[#allocation2 + $0x288] sm:$0xff] }
  0x20   :  { %671 = vmatpush1.bf16.msra.mxu1 %v670_v38  ;;  %609 = vmatprep.subr.bf16.mxu0 %v608_v39  ;;  %v120_v59 = vld [vmem:[#allocation2 + $0x2c8] sm:$0xff]  ;;  %v114_v60 = vld [vmem:[#allocation2 + $0x298] sm:$0xff]  ;;  %v614_v62 = vpack.c.bf16 %v103_v54, %v95_v53  ;;  %v678_v63 = vpack.c.bf16 %v105_v57, %v97_v55  ;;  %v111_v1 = vld [vmem:[#allocation2 + $0x280] sm:$0xff] }
  0x21   :  { %673 = vmatprep.subr.bf16.mxu1 %v672_v43  ;;  %v122_v61 = vld [vmem:[#allocation2 + $0x2d8] sm:$0xff]  ;;  %v616_v0 = vpack.c.bf16 %v120_v59, %v112_v58  ;;  %v119_v2 = vld [vmem:[#allocation2 + $0x2c0] sm:$0xff]  ;;  %v113_v3 = vld [vmem:[#allocation2 + $0x290] sm:$0xff] }
  0x22   :  { %v680_v4 = vpack.c.bf16 %v122_v61, %v114_v60  ;;  %v121_v5 = vld [vmem:[#allocation2 + $0x2d0] sm:$0xff]  ;;  %v128_v6 = vld [vmem:[#allocation2 + $0x308] sm:$0xff]  ;;  %v130_v8 = vld [vmem:[#allocation2 + $0x318] sm:$0xff]  ;;  %v618_v10 = vpack.c.bf16 %v119_v2, %v111_v1 }
  0x23   :  { %611 = vmatpush1.bf16.msra.mxu0 %v610_v50  ;;  %v136_v7 = vld [vmem:[#allocation2 + $0x348] sm:$0xff]  ;;  %v138_v9 = vld [vmem:[#allocation2 + $0x358] sm:$0xff]  ;;  %v682_v11 = vpack.c.bf16 %v121_v5, %v113_v3  ;;  %v127_v13 = vld [vmem:[#allocation2 + $0x300] sm:$0xff] }
  0x24   :  { %675 = vmatpush1.bf16.msra.mxu1 %v674_v51  ;;  %613 = vmatprep.subr.bf16.mxu0 %v612_v52  ;;  %v620_v12 = vpack.c.bf16 %v136_v7, %v128_v6  ;;  %v135_v14 = vld [vmem:[#allocation2 + $0x340] sm:$0xff]  ;;  %v129_v15 = vld [vmem:[#allocation2 + $0x310] sm:$0xff]  ;;  %v684_v16 = vpack.c.bf16 %v138_v9, %v130_v8  ;;  %v144_v18 = vld [vmem:[#allocation2 + $0x388] sm:$0xff] }
  0x25   :  { %677 = vmatprep.subr.bf16.mxu1 %v676_v56  ;;  %v137_v17 = vld [vmem:[#allocation2 + $0x350] sm:$0xff]  ;;  %v152_v19 = vld [vmem:[#allocation2 + $0x3c8] sm:$0xff]  ;;  %v146_v20 = vld [vmem:[#allocation2 + $0x398] sm:$0xff]  ;;  %v622_v22 = vpack.c.bf16 %v135_v14, %v127_v13 }
  0x26   :  { %v154_v21 = vld [vmem:[#allocation2 + $0x3d8] sm:$0xff]  ;;  %v686_v23 = vpack.c.bf16 %v137_v17, %v129_v15  ;;  %v624_v24 = vpack.c.bf16 %v152_v19, %v144_v18  ;;  %v143_v25 = vld [vmem:[#allocation2 + $0x380] sm:$0xff]  ;;  %v145_v27 = vld [vmem:[#allocation2 + $0x390] sm:$0xff] }
  0x27   :  { %615 = vmatpush1.bf16.msra.mxu0 %v614_v62  ;;  %v151_v26 = vld [vmem:[#allocation2 + $0x3c0] sm:$0xff]  ;;  %v688_v28 = vpack.c.bf16 %v154_v21, %v146_v20  ;;  %v153_v29 = vld [vmem:[#allocation2 + $0x3d0] sm:$0xff]  ;;  %v160_v30 = vld [vmem:[#allocation2 + $0x408] sm:$0xff] }
  0x28   :  { %679 = vmatpush1.bf16.msra.mxu1 %v678_v63  ;;  %617 = vmatprep.subr.bf16.mxu0 %v616_v0  ;;  %v168_v31 = vld [vmem:[#allocation2 + $0x448] sm:$0xff]  ;;  %v162_v32 = vld [vmem:[#allocation2 + $0x418] sm:$0xff]  ;;  %v626_v34 = vpack.c.bf16 %v151_v26, %v143_v25  ;;  %v690_v35 = vpack.c.bf16 %v153_v29, %v145_v27  ;;  %v159_v37 = vld [vmem:[#allocation2 + $0x400] sm:$0xff] }
  0x29   :  { %681 = vmatprep.subr.bf16.mxu1 %v680_v4  ;;  %v170_v33 = vld [vmem:[#allocation2 + $0x458] sm:$0xff]  ;;  %v628_v36 = vpack.c.bf16 %v168_v31, %v160_v30  ;;  %v167_v38 = vld [vmem:[#allocation2 + $0x440] sm:$0xff]  ;;  %v161_v39 = vld [vmem:[#allocation2 + $0x410] sm:$0xff] }
  0x2a   :  { %v692_v40 = vpack.c.bf16 %v170_v33, %v162_v32  ;;  %v169_v41 = vld [vmem:[#allocation2 + $0x450] sm:$0xff]  ;;  %v176_v42 = vld [vmem:[#allocation2 + $0x488] sm:$0xff]  ;;  %v178_v44 = vld [vmem:[#allocation2 + $0x498] sm:$0xff]  ;;  %v630_v46 = vpack.c.bf16 %v167_v38, %v159_v37 }
  0x2b   :  { %619 = vmatpush1.bf16.msra.mxu0 %v618_v10  ;;  %v184_v43 = vld [vmem:[#allocation2 + $0x4c8] sm:$0xff]  ;;  %v186_v45 = vld [vmem:[#allocation2 + $0x4d8] sm:$0xff]  ;;  %v694_v47 = vpack.c.bf16 %v169_v41, %v161_v39  ;;  %v175_v49 = vld [vmem:[#allocation2 + $0x480] sm:$0xff] }
  0x2c   :  { %683 = vmatpush1.bf16.msra.mxu1 %v682_v11  ;;  %621 = vmatprep.subr.bf16.mxu0 %v620_v12  ;;  %v632_v48 = vpack.c.bf16 %v184_v43, %v176_v42  ;;  %v183_v50 = vld [vmem:[#allocation2 + $0x4c0] sm:$0xff]  ;;  %v177_v51 = vld [vmem:[#allocation2 + $0x490] sm:$0xff]  ;;  %v696_v52 = vpack.c.bf16 %v186_v45, %v178_v44  ;;  %v192_v54 = vld [vmem:[#allocation2 + $0x508] sm:$0xff] }
  0x2d   :  { %685 = vmatprep.subr.bf16.mxu1 %v684_v16  ;;  %v185_v53 = vld [vmem:[#allocation2 + $0x4d0] sm:$0xff]  ;;  %v200_v55 = vld [vmem:[#allocation2 + $0x548] sm:$0xff]  ;;  %v194_v56 = vld [vmem:[#allocation2 + $0x518] sm:$0xff]  ;;  %v634_v58 = vpack.c.bf16 %v183_v50, %v175_v49 }
  0x2e   :  { %v202_v57 = vld [vmem:[#allocation2 + $0x558] sm:$0xff]  ;;  %v698_v59 = vpack.c.bf16 %v185_v53, %v177_v51  ;;  %v636_v60 = vpack.c.bf16 %v200_v55, %v192_v54  ;;  %v191_v61 = vld [vmem:[#allocation2 + $0x500] sm:$0xff]  ;;  %v193_v63 = vld [vmem:[#allocation2 + $0x510] sm:$0xff] }
  0x2f   :  { %623 = vmatpush1.bf16.msra.mxu0 %v622_v22  ;;  %v199_v62 = vld [vmem:[#allocation2 + $0x540] sm:$0xff]  ;;  %v700_v0 = vpack.c.bf16 %v202_v57, %v194_v56  ;;  %v201_v1 = vld [vmem:[#allocation2 + $0x550] sm:$0xff]  ;;  %v208_v2 = vld [vmem:[#allocation2 + $0x588] sm:$0xff] }
  0x30   :  { %687 = vmatpush1.bf16.msra.mxu1 %v686_v23  ;;  %625 = vmatprep.subr.bf16.mxu0 %v624_v24  ;;  %v216_v3 = vld [vmem:[#allocation2 + $0x5c8] sm:$0xff]  ;;  %v210_v4 = vld [vmem:[#allocation2 + $0x598] sm:$0xff]  ;;  %v638_v6 = vpack.c.bf16 %v199_v62, %v191_v61  ;;  %v207_v7 = vld [vmem:[#allocation2 + $0x580] sm:$0xff]  ;;  %v702_v8 = vpack.c.bf16 %v201_v1, %v193_v63 }
  0x31   :  { %689 = vmatprep.subr.bf16.mxu1 %v688_v28  ;;  %v218_v5 = vld [vmem:[#allocation2 + $0x5d8] sm:$0xff]  ;;  %v640_v9 = vpack.c.bf16 %v216_v3, %v208_v2  ;;  %v215_v10 = vld [vmem:[#allocation2 + $0x5c0] sm:$0xff]  ;;  %v209_v11 = vld [vmem:[#allocation2 + $0x590] sm:$0xff] }
  0x32   :  { %v217_v12 = vld [vmem:[#allocation2 + $0x5d0] sm:$0xff]  ;;  %v704_v13 = vpack.c.bf16 %v218_v5, %v210_v4  ;;  %v224_v14 = vld [vmem:[#allocation2 + $0x608] sm:$0xff]  ;;  %v226_v17 = vld [vmem:[#allocation2 + $0x618] sm:$0xff]  ;;  %v642_v19 = vpack.c.bf16 %v215_v10, %v207_v7 }
  0x33   :  { %627 = vmatpush1.bf16.msra.mxu0 %v626_v34  ;;  %v232_v15 = vld [vmem:[#allocation2 + $0x648] sm:$0xff]  ;;  %v234_v18 = vld [vmem:[#allocation2 + $0x658] sm:$0xff]  ;;  %v706_v20 = vpack.c.bf16 %v217_v12, %v209_v11  ;;  %v223_v22 = vld [vmem:[#allocation2 + $0x600] sm:$0xff] }
  0x34   :  { %691 = vmatpush1.bf16.msra.mxu1 %v690_v35  ;;  %629 = vmatprep.subr.bf16.mxu0 %v628_v36  ;;  %v927_v16 = vld [vmem:[%s967_s1 + $0x8] sm:$0xff]  ;;  %v644_v21 = vpack.c.bf16 %v232_v15, %v224_v14  ;;  %v231_v23 = vld [vmem:[#allocation2 + $0x640] sm:$0xff]  ;;  %v225_v24 = vld [vmem:[#allocation2 + $0x610] sm:$0xff]  ;;  %v708_v25 = vpack.c.bf16 %v234_v18, %v226_v17 }
  0x35   :  { %693 = vmatprep.subr.bf16.mxu1 %v692_v40  ;;  %351 = vmatprep.mubr.f32.mxu0 %v927_v16  ;;  %v233_v26 = vld [vmem:[#allocation2 + $0x650] sm:$0xff]  ;;  %v240_v27 = vld [vmem:[#allocation2 + $0x688] sm:$0xff]  ;;  %v242_v29 = vld [vmem:[#allocation2 + $0x698] sm:$0xff]  ;;  %v646_v31 = vpack.c.bf16 %v231_v23, %v223_v22 }
  0x36   :  { %422 = vmatprep.mubr.f32.mxu1 %v927_v16  ;;  %v248_v28 = vld [vmem:[#allocation2 + $0x6c8] sm:$0xff]  ;;  %v250_v30 = vld [vmem:[#allocation2 + $0x6d8] sm:$0xff]  ;;  %v710_v32 = vpack.c.bf16 %v233_v26, %v225_v24  ;;  %v239_v34 = vld [vmem:[#allocation2 + $0x680] sm:$0xff] }
  0x37   :  { %631 = vmatpush1.bf16.msra.mxu0 %v630_v46  ;;  %v648_v33 = vpack.c.bf16 %v248_v28, %v240_v27  ;;  %v247_v35 = vld [vmem:[#allocation2 + $0x6c0] sm:$0xff]  ;;  %v241_v36 = vld [vmem:[#allocation2 + $0x690] sm:$0xff]  ;;  %v712_v37 = vpack.c.bf16 %v250_v30, %v242_v29  ;;  %v256_v39 = vld [vmem:[#allocation2 + $0x708] sm:$0xff] }
  0x38   :  { %695 = vmatpush1.bf16.msra.mxu1 %v694_v47  ;;  %633 = vmatprep.subr.bf16.mxu0 %v632_v48  ;;  %v249_v38 = vld [vmem:[#allocation2 + $0x6d0] sm:$0xff]  ;;  %v264_v40 = vld [vmem:[#allocation2 + $0x748] sm:$0xff]  ;;  %v258_v41 = vld [vmem:[#allocation2 + $0x718] sm:$0xff]  ;;  %v650_v43 = vpack.c.bf16 %v247_v35, %v239_v34 }
  0x39   :  { %697 = vmatprep.subr.bf16.mxu1 %v696_v52  ;;  %v266_v42 = vld [vmem:[#allocation2 + $0x758] sm:$0xff]  ;;  %v714_v44 = vpack.c.bf16 %v249_v38, %v241_v36  ;;  %v652_v45 = vpack.c.bf16 %v264_v40, %v256_v39  ;;  %v255_v46 = vld [vmem:[#allocation2 + $0x700] sm:$0xff]  ;;  %v257_v48 = vld [vmem:[#allocation2 + $0x710] sm:$0xff] }
  0x3a   :  { %v263_v47 = vld [vmem:[#allocation2 + $0x740] sm:$0xff]  ;;  %v716_v49 = vpack.c.bf16 %v266_v42, %v258_v41  ;;  %v265_v50 = vld [vmem:[#allocation2 + $0x750] sm:$0xff]  ;;  %v272_v51 = vld [vmem:[#allocation2 + $0x788] sm:$0xff] }
  0x3b   :  { %635 = vmatpush1.bf16.msra.mxu0 %v634_v58  ;;  %v280_v52 = vld [vmem:[#allocation2 + $0x7c8] sm:$0xff]  ;;  %v274_v53 = vld [vmem:[#allocation2 + $0x798] sm:$0xff]  ;;  %v654_v55 = vpack.c.bf16 %v263_v47, %v255_v46  ;;  %v718_v56 = vpack.c.bf16 %v265_v50, %v257_v48  ;;  %v271_v58 = vld [vmem:[#allocation2 + $0x780] sm:$0xff] }
  0x3c   :  { %699 = vmatpush1.bf16.msra.mxu1 %v698_v59  ;;  %637 = vmatprep.subr.bf16.mxu0 %v636_v60  ;;  %v282_v54 = vld [vmem:[#allocation2 + $0x7d8] sm:$0xff]  ;;  %v656_v57 = vpack.c.bf16 %v280_v52, %v272_v51  ;;  %v279_v59 = vld [vmem:[#allocation2 + $0x7c0] sm:$0xff]  ;;  %v273_v60 = vld [vmem:[#allocation2 + $0x790] sm:$0xff] }
  0x3d   :  { %701 = vmatprep.subr.bf16.mxu1 %v700_v0  ;;  %v720_v61 = vpack.c.bf16 %v282_v54, %v274_v53  ;;  %v281_v62 = vld [vmem:[#allocation2 + $0x7d0] sm:$0xff]  ;;  %v36_v63 = vld [vmem:[#allocation2 + $0x28] sm:$0xff]  ;;  %v38_v1 = vld [vmem:[#allocation2 + $0x38] sm:$0xff]  ;;  %v658_v3 = vpack.c.bf16 %v279_v59, %v271_v58 }
  0x3e   :  { %v44_v0 = vld [vmem:[#allocation2 + $0x68] sm:$0xff]  ;;  %v46_v2 = vld [vmem:[#allocation2 + $0x78] sm:$0xff]  ;;  %v722_v4 = vpack.c.bf16 %v281_v62, %v273_v60  ;;  %v43_v7 = vld [vmem:[#allocation2 + $0x60] sm:$0xff] }
  0x3f   :  { %639 = vmatpush1.bf16.msra.mxu0 %v638_v6  ;;  %v724_v5 = vpack.c.bf16 %v44_v0, %v36_v63  ;;  %v35_v6 = vld [vmem:[#allocation2 + $0x20] sm:$0xff]  ;;  %v45_v10 = vld [vmem:[#allocation2 + $0x70] sm:$0xff]  ;;  %v52_v11 = vld [vmem:[#allocation2 + $0xa8] sm:$0xff] }
  0x40   :  { %703 = vmatpush1.bf16.msra.mxu1 %v702_v8  ;;  %641 = vmatprep.subr.bf16.mxu0 %v640_v9  ;;  %v37_v8 = vld [vmem:[#allocation2 + $0x30] sm:$0xff]  ;;  %v788_v9 = vpack.c.bf16 %v46_v2, %v38_v1  ;;  %v60_v12 = vld [vmem:[#allocation2 + $0xe8] sm:$0xff]  ;;  %v62_v14 = vld [vmem:[#allocation2 + $0xf8] sm:$0xff]  ;;  %v726_v17 = vpack.c.bf16 %v43_v7, %v35_v6 }
  0x41   :  { %705 = vmatprep.subr.bf16.mxu1 %v704_v13  ;;  %v54_v13 = vld [vmem:[#allocation2 + $0xb8] sm:$0xff]  ;;  %v934_v15 = vld [vmem:[%s967_s1] sm:$0xff]  ;;  %v790_v18 = vpack.c.bf16 %v45_v10, %v37_v8  ;;  %v53_v22 = vld [vmem:[#allocation2 + $0xb0] sm:$0xff] }
  0x42   :  { %v792_v23 = vpack.c.bf16 %v62_v14, %v54_v13  ;;  %v61_v24 = vld [vmem:[#allocation2 + $0xf0] sm:$0xff]  ;;  %v76_v26 = vld [vmem:[#allocation2 + $0x168] sm:$0xff]  ;;  %v70_v27 = vld [vmem:[#allocation2 + $0x138] sm:$0xff] }
  0x43   :  { %643 = vmatpush1.bf16.msra.mxu0 %v642_v19  ;;  %v728_v19 = vpack.c.bf16 %v60_v12, %v52_v11  ;;  %v78_v28 = vld [vmem:[#allocation2 + $0x178] sm:$0xff]  ;;  %v794_v30 = vpack.c.bf16 %v61_v24, %v53_v22  ;;  %v69_v34 = vld [vmem:[#allocation2 + $0x130] sm:$0xff]  ;;  %v92_v38 = vld [vmem:[#allocation2 + $0x1e8] sm:$0xff] }
  0x44   :  { %707 = vmatpush1.bf16.msra.mxu1 %v706_v20  ;;  %645 = vmatprep.subr.bf16.mxu0 %v644_v21  ;;  %v51_v20 = vld [vmem:[#allocation2 + $0xa0] sm:$0xff]  ;;  %v796_v35 = vpack.c.bf16 %v78_v28, %v70_v27  ;;  %v77_v36 = vld [vmem:[#allocation2 + $0x170] sm:$0xff]  ;;  %v86_v39 = vld [vmem:[#allocation2 + $0x1b8] sm:$0xff] }
  0x45   :  { %709 = vmatprep.subr.bf16.mxu1 %v708_v25  ;;  %v59_v21 = vld [vmem:[#allocation2 + $0xe0] sm:$0xff]  ;;  %v68_v25 = vld [vmem:[#allocation2 + $0x128] sm:$0xff]  ;;  %v94_v40 = vld [vmem:[#allocation2 + $0x1f8] sm:$0xff]  ;;  %v798_v42 = vpack.c.bf16 %v77_v36, %v69_v34 }
  0x46   :  { %v730_v29 = vpack.c.bf16 %v59_v21, %v51_v20  ;;  %v85_v46 = vld [vmem:[#allocation2 + $0x1b0] sm:$0xff]  ;;  %v800_v47 = vpack.c.bf16 %v94_v40, %v86_v39  ;;  %v108_v50 = vld [vmem:[#allocation2 + $0x268] sm:$0xff]  ;;  %v102_v51 = vld [vmem:[#allocation2 + $0x238] sm:$0xff] }
  0x47   :  { %647 = vmatpush1.bf16.msra.mxu0 %v646_v31  ;;  %v732_v31 = vpack.c.bf16 %v76_v26, %v68_v25  ;;  %v93_v48 = vld [vmem:[#allocation2 + $0x1f0] sm:$0xff]  ;;  %v110_v52 = vld [vmem:[#allocation2 + $0x278] sm:$0xff]  ;;  %v116_v60 = vld [vmem:[#allocation2 + $0x2a8] sm:$0xff] }
  0x48   :  { %711 = vmatpush1.bf16.msra.mxu1 %v710_v32  ;;  %649 = vmatprep.subr.bf16.mxu0 %v648_v33  ;;  %v67_v32 = vld [vmem:[#allocation2 + $0x120] sm:$0xff]  ;;  %v804_v58 = vpack.c.bf16 %v110_v52, %v102_v51  ;;  %v109_v59 = vld [vmem:[#allocation2 + $0x270] sm:$0xff]  ;;  %v118_v62 = vld [vmem:[#allocation2 + $0x2b8] sm:$0xff] }
  0x49   :  { %713 = vmatprep.subr.bf16.mxu1 %v712_v37  ;;  %v75_v33 = vld [vmem:[#allocation2 + $0x160] sm:$0xff]  ;;  %v84_v37 = vld [vmem:[#allocation2 + $0x1a8] sm:$0xff]  ;;  %v126_v63 = vld [vmem:[#allocation2 + $0x2f8] sm:$0xff] }
  0x4a   :  { %v734_v41 = vpack.c.bf16 %v75_v33, %v67_v32  ;;  %v808_v6 = vpack.c.bf16 %v126_v63, %v118_v62  ;;  %v125_v7 = vld [vmem:[#allocation2 + $0x2f0] sm:$0xff]  ;;  %v132_v8 = vld [vmem:[#allocation2 + $0x328] sm:$0xff]  ;;  %v134_v10 = vld [vmem:[#allocation2 + $0x338] sm:$0xff] }
  0x4b   :  { %651 = vmatpush1.bf16.msra.mxu0 %v650_v43  ;;  %v736_v43 = vpack.c.bf16 %v92_v38, %v84_v37  ;;  %v142_v11 = vld [vmem:[#allocation2 + $0x378] sm:$0xff]  ;;  %v141_v21 = vld [vmem:[#allocation2 + $0x370] sm:$0xff]  ;;  %v148_v22 = vld [vmem:[#allocation2 + $0x3a8] sm:$0xff] }
  0x4c   :  { %715 = vmatpush1.bf16.msra.mxu1 %v714_v44  ;;  %653 = vmatprep.subr.bf16.mxu0 %v652_v45  ;;  %v83_v44 = vld [vmem:[#allocation2 + $0x1a0] sm:$0xff]  ;;  %v812_v20 = vpack.c.bf16 %v142_v11, %v134_v10  ;;  %v150_v24 = vld [vmem:[#allocation2 + $0x3b8] sm:$0xff]  ;;  %v157_v33 = vld [vmem:[#allocation2 + $0x3f0] sm:$0xff] }
  0x4d   :  { %717 = vmatprep.subr.bf16.mxu1 %v716_v49  ;;  %v91_v45 = vld [vmem:[#allocation2 + $0x1e0] sm:$0xff]  ;;  %v100_v49 = vld [vmem:[#allocation2 + $0x228] sm:$0xff]  ;;  %v158_v25 = vld [vmem:[#allocation2 + $0x3f8] sm:$0xff] }
  0x4e   :  { %v738_v53 = vpack.c.bf16 %v91_v45, %v83_v44  ;;  %v740_v54 = vpack.c.bf16 %v108_v50, %v100_v49  ;;  %v816_v32 = vpack.c.bf16 %v158_v25, %v150_v24  ;;  %v164_v34 = vld [vmem:[#allocation2 + $0x428] sm:$0xff]  ;;  %v166_v36 = vld [vmem:[#allocation2 + $0x438] sm:$0xff]  ;;  %v173_v45 = vld [vmem:[#allocation2 + $0x470] sm:$0xff] }
  0x4f   :  { %655 = vmatpush1.bf16.msra.mxu0 %v654_v55  ;;  %v99_v55 = vld [vmem:[#allocation2 + $0x220] sm:$0xff]  ;;  %v174_v37 = vld [vmem:[#allocation2 + $0x478] sm:$0xff] }
  0x50   :  { %719 = vmatpush1.bf16.msra.mxu1 %v718_v56  ;;  %657 = vmatprep.subr.bf16.mxu0 %v656_v57  ;;  %v107_v56 = vld [vmem:[#allocation2 + $0x260] sm:$0xff]  ;;  %v101_v57 = vld [vmem:[#allocation2 + $0x230] sm:$0xff]  ;;  %v820_v44 = vpack.c.bf16 %v174_v37, %v166_v36  ;;  %v190_v49 = vld [vmem:[#allocation2 + $0x4f8] sm:$0xff] }
  0x51   :  { %721 = vmatprep.subr.bf16.mxu1 %v720_v61  ;;  %v124_v61 = vld [vmem:[#allocation2 + $0x2e8] sm:$0xff]  ;;  %v742_v0 = vpack.c.bf16 %v107_v56, %v99_v55  ;;  %v806_v1 = vpack.c.bf16 %v109_v59, %v101_v57  ;;  %v189_v56 = vld [vmem:[#allocation2 + $0x4f0] sm:$0xff]  ;;  %v198_v59 = vld [vmem:[#allocation2 + $0x538] sm:$0xff] }
  0x52   :  { %v744_v2 = vpack.c.bf16 %v124_v61, %v116_v60  ;;  %v196_v57 = vld [vmem:[#allocation2 + $0x528] sm:$0xff]  ;;  %v206_v60 = vld [vmem:[#allocation2 + $0x578] sm:$0xff] }
  0x53   :  { %659 = vmatpush1.bf16.msra.mxu0 %v658_v3  ;;  %v115_v3 = vld [vmem:[#allocation2 + $0x2a0] sm:$0xff] }
  0x54   :  { %723 = vmatpush1.bf16.msra.mxu1 %v722_v4  ;;  %725 = vmatprep.subr.bf16.mxu0 %v724_v5  ;;  %v123_v4 = vld [vmem:[#allocation2 + $0x2e0] sm:$0xff]  ;;  %v117_v5 = vld [vmem:[#allocation2 + $0x2b0] sm:$0xff] }
  0x55   :  { %789 = vmatprep.subr.bf16.mxu1 %v788_v9  ;;  %v140_v9 = vld [vmem:[#allocation2 + $0x368] sm:$0xff]  ;;  %v746_v12 = vpack.c.bf16 %v123_v4, %v115_v3  ;;  %v810_v13 = vpack.c.bf16 %v125_v7, %v117_v5  ;;  %v828_v3 = vpack.c.bf16 %v206_v60, %v198_v59  ;;  %v205_v4 = vld [vmem:[#allocation2 + $0x570] sm:$0xff]  ;;  %v214_v7 = vld [vmem:[#allocation2 + $0x5b8] sm:$0xff] }
  0x56   :  { %352 = vmatmul.mubr.f32.vlgmr.msra.gmra.mrb[0].mxu0 %v934_v15  ;;  %v748_v14 = vpack.c.bf16 %v140_v9, %v132_v8  ;;  %v212_v5 = vld [vmem:[#allocation2 + $0x5a8] sm:$0xff]  ;;  %v222_v8 = vld [vmem:[#allocation2 + $0x5f8] sm:$0xff] }
  0x57   :  { %423 = vmatmul.mubr.f32.vlgmr.msra.gmra.mrb[0].mxu1 %v934_v15  ;;  %727 = vmatpush1.bf16.msra.mxu0 %v726_v17  ;;  %v131_v17 = vld [vmem:[#allocation2 + $0x320] sm:$0xff] }
  0x58   :  { %791 = vmatpush1.bf16.msra.mxu1 %v790_v18  ;;  %729 = vmatprep.subr.bf16.mxu0 %v728_v19  ;;  %v139_v18 = vld [vmem:[#allocation2 + $0x360] sm:$0xff]  ;;  %v133_v19 = vld [vmem:[#allocation2 + $0x330] sm:$0xff] }
  0x59   :  { %793 = vmatprep.subr.bf16.mxu1 %v792_v23  ;;  %493 = vmatprep.mubr.f32.mxu0 %v927_v16  ;;  %v156_v23 = vld [vmem:[#allocation2 + $0x3e8] sm:$0xff]  ;;  %v750_v26 = vpack.c.bf16 %v139_v18, %v131_v17  ;;  %v814_v27 = vpack.c.bf16 %v141_v21, %v133_v19  ;;  %v832_v17 = vpack.c.bf16 %v222_v8, %v214_v7  ;;  %v221_v18 = vld [vmem:[#allocation2 + $0x5f0] sm:$0xff]  ;;  %v230_v21 = vld [vmem:[#allocation2 + $0x638] sm:$0xff] }
  0x5a   :  { %564 = vmatprep.mubr.f32.mxu1 %v927_v16  ;;  %v802_v16 = vpack.c.bf16 %v93_v48, %v85_v46  ;;  %v752_v28 = vpack.c.bf16 %v156_v23, %v148_v22  ;;  %v180_v46 = vld [vmem:[#allocation2 + $0x4a8] sm:$0xff]  ;;  %v182_v48 = vld [vmem:[#allocation2 + $0x4b8] sm:$0xff] }
  0x5b   :  { %731 = vmatpush1.bf16.msra.mxu0 %v730_v29  ;;  %v147_v29 = vld [vmem:[#allocation2 + $0x3a0] sm:$0xff]  ;;  %v824_v55 = vpack.c.bf16 %v190_v49, %v182_v48  ;;  %v228_v19 = vld [vmem:[#allocation2 + $0x628] sm:$0xff]  ;;  %v238_v22 = vld [vmem:[#allocation2 + $0x678] sm:$0xff] }
  0x5c   :  { %795 = vmatpush1.bf16.msra.mxu1 %v794_v30  ;;  %733 = vmatprep.subr.bf16.mxu0 %v732_v31  ;;  %v155_v30 = vld [vmem:[#allocation2 + $0x3e0] sm:$0xff]  ;;  %v149_v31 = vld [vmem:[#allocation2 + $0x3b0] sm:$0xff] }
  0x5d   :  { %797 = vmatprep.subr.bf16.mxu1 %v796_v35  ;;  %v172_v35 = vld [vmem:[#allocation2 + $0x468] sm:$0xff]  ;;  %v754_v38 = vpack.c.bf16 %v155_v30, %v147_v29  ;;  %v818_v39 = vpack.c.bf16 %v157_v33, %v149_v31  ;;  %v836_v29 = vpack.c.bf16 %v238_v22, %v230_v21  ;;  %v237_v30 = vld [vmem:[#allocation2 + $0x670] sm:$0xff]  ;;  %v246_v33 = vld [vmem:[#allocation2 + $0x6b8] sm:$0xff] }
  0x5e   :  { %v756_v40 = vpack.c.bf16 %v172_v35, %v164_v34  ;;  %v244_v31 = vld [vmem:[#allocation2 + $0x6a8] sm:$0xff]  ;;  %v254_v34 = vld [vmem:[#allocation2 + $0x6f8] sm:$0xff] }
  0x5f   :  { %735 = vmatpush1.bf16.msra.mxu0 %v734_v41  ;;  %v163_v41 = vld [vmem:[#allocation2 + $0x420] sm:$0xff] }
  0x60   :  { %799 = vmatpush1.bf16.msra.mxu1 %v798_v42  ;;  %737 = vmatprep.subr.bf16.mxu0 %v736_v43  ;;  %v171_v42 = vld [vmem:[#allocation2 + $0x460] sm:$0xff]  ;;  %v165_v43 = vld [vmem:[#allocation2 + $0x430] sm:$0xff] }
  0x61   :  { %801 = vmatprep.subr.bf16.mxu1 %v800_v47  ;;  %v188_v47 = vld [vmem:[#allocation2 + $0x4e8] sm:$0xff]  ;;  %v758_v50 = vpack.c.bf16 %v171_v42, %v163_v41  ;;  %v822_v51 = vpack.c.bf16 %v173_v45, %v165_v43  ;;  %v840_v41 = vpack.c.bf16 %v254_v34, %v246_v33  ;;  %v253_v42 = vld [vmem:[#allocation2 + $0x6f0] sm:$0xff]  ;;  %v262_v45 = vld [vmem:[#allocation2 + $0x738] sm:$0xff] }
  0x62   :  { %v760_v52 = vpack.c.bf16 %v188_v47, %v180_v46  ;;  %v260_v43 = vld [vmem:[#allocation2 + $0x728] sm:$0xff]  ;;  %v270_v46 = vld [vmem:[#allocation2 + $0x778] sm:$0xff] }
  0x63   :  { %739 = vmatpush1.bf16.msra.mxu0 %v738_v53  ;;  %v179_v53 = vld [vmem:[#allocation2 + $0x4a0] sm:$0xff] }
  0x64   :  { %803 = vmatpush1.bf16.msra.mxu1 %v802_v16  ;;  %741 = vmatprep.subr.bf16.mxu0 %v740_v54  ;;  %v187_v16 = vld [vmem:[#allocation2 + $0x4e0] sm:$0xff]  ;;  %v181_v54 = vld [vmem:[#allocation2 + $0x4b0] sm:$0xff] }
  0x65   :  { %805 = vmatprep.subr.bf16.mxu1 %v804_v58  ;;  %v204_v58 = vld [vmem:[#allocation2 + $0x568] sm:$0xff]  ;;  %v762_v61 = vpack.c.bf16 %v187_v16, %v179_v53  ;;  %v826_v62 = vpack.c.bf16 %v189_v56, %v181_v54  ;;  %v844_v53 = vpack.c.bf16 %v270_v46, %v262_v45  ;;  %v269_v16 = vld [vmem:[#allocation2 + $0x770] sm:$0xff]  ;;  %v278_v56 = vld [vmem:[#allocation2 + $0x7b8] sm:$0xff] }
  0x66   :  { %v764_v63 = vpack.c.bf16 %v204_v58, %v196_v57  ;;  %v276_v54 = vld [vmem:[#allocation2 + $0x7a8] sm:$0xff]  ;;  %v286_v57 = vld [vmem:[#allocation2 + $0x7f8] sm:$0xff] }
  0x67   :  { %743 = vmatpush1.bf16.msra.mxu0 %v742_v0  ;;  %v195_v0 = vld [vmem:[#allocation2 + $0x520] sm:$0xff] }
  0x68   :  { %807 = vmatpush1.bf16.msra.mxu1 %v806_v1  ;;  %745 = vmatprep.subr.bf16.mxu0 %v744_v2  ;;  %v203_v1 = vld [vmem:[#allocation2 + $0x560] sm:$0xff]  ;;  %v197_v2 = vld [vmem:[#allocation2 + $0x530] sm:$0xff] }
  0x69   :  { %809 = vmatprep.subr.bf16.mxu1 %v808_v6  ;;  %v220_v6 = vld [vmem:[#allocation2 + $0x5e8] sm:$0xff]  ;;  %v766_v9 = vpack.c.bf16 %v203_v1, %v195_v0  ;;  %v830_v10 = vpack.c.bf16 %v205_v4, %v197_v2  ;;  %v277_v0 = vld [vmem:[#allocation2 + $0x7b0] sm:$0xff] }
  0x6a   :  { %v768_v11 = vpack.c.bf16 %v220_v6, %v212_v5  ;;  %v285_v1 = vld [vmem:[#allocation2 + $0x7f0] sm:$0xff] }
  0x6b   :  { %747 = vmatpush1.bf16.msra.mxu0 %v746_v12  ;;  %v211_v12 = vld [vmem:[#allocation2 + $0x5a0] sm:$0xff] }
  0x6c   :  { %811 = vmatpush1.bf16.msra.mxu1 %v810_v13  ;;  %749 = vmatprep.subr.bf16.mxu0 %v748_v14  ;;  %v219_v13 = vld [vmem:[#allocation2 + $0x5e0] sm:$0xff]  ;;  %v213_v14 = vld [vmem:[#allocation2 + $0x5b0] sm:$0xff] }
  0x6d   :  { %813 = vmatprep.subr.bf16.mxu1 %v812_v20  ;;  %v236_v20 = vld [vmem:[#allocation2 + $0x668] sm:$0xff]  ;;  %v770_v23 = vpack.c.bf16 %v219_v13, %v211_v12  ;;  %v834_v24 = vpack.c.bf16 %v221_v18, %v213_v14 }
  0x6e   :  { %v772_v25 = vpack.c.bf16 %v236_v20, %v228_v19 }
  0x6f   :  { %751 = vmatpush1.bf16.msra.mxu0 %v750_v26  ;;  %v227_v26 = vld [vmem:[#allocation2 + $0x620] sm:$0xff] }
  0x70   :  { %815 = vmatpush1.bf16.msra.mxu1 %v814_v27  ;;  %753 = vmatprep.subr.bf16.mxu0 %v752_v28  ;;  %v235_v27 = vld [vmem:[#allocation2 + $0x660] sm:$0xff]  ;;  %v229_v28 = vld [vmem:[#allocation2 + $0x630] sm:$0xff] }
  0x71   :  { %817 = vmatprep.subr.bf16.mxu1 %v816_v32  ;;  %v252_v32 = vld [vmem:[#allocation2 + $0x6e8] sm:$0xff]  ;;  %v774_v35 = vpack.c.bf16 %v235_v27, %v227_v26  ;;  %v838_v36 = vpack.c.bf16 %v237_v30, %v229_v28 }
  0x72   :  { %v776_v37 = vpack.c.bf16 %v252_v32, %v244_v31 }
  0x73   :  { %755 = vmatpush1.bf16.msra.mxu0 %v754_v38  ;;  %v243_v38 = vld [vmem:[#allocation2 + $0x6a0] sm:$0xff] }
  0x74   :  { %819 = vmatpush1.bf16.msra.mxu1 %v818_v39  ;;  %757 = vmatprep.subr.bf16.mxu0 %v756_v40  ;;  %v251_v39 = vld [vmem:[#allocation2 + $0x6e0] sm:$0xff]  ;;  %v245_v40 = vld [vmem:[#allocation2 + $0x6b0] sm:$0xff] }
  0x75   :  { %821 = vmatprep.subr.bf16.mxu1 %v820_v44  ;;  %v268_v44 = vld [vmem:[#allocation2 + $0x768] sm:$0xff]  ;;  %v778_v47 = vpack.c.bf16 %v251_v39, %v243_v38  ;;  %v842_v48 = vpack.c.bf16 %v253_v42, %v245_v40 }
  0x76   :  { %v780_v49 = vpack.c.bf16 %v268_v44, %v260_v43 }
  0x77   :  { %759 = vmatpush1.bf16.msra.mxu0 %v758_v50  ;;  %v259_v50 = vld [vmem:[#allocation2 + $0x720] sm:$0xff] }
  0x78   :  { %823 = vmatpush1.bf16.msra.mxu1 %v822_v51  ;;  %761 = vmatprep.subr.bf16.mxu0 %v760_v52  ;;  %v267_v51 = vld [vmem:[#allocation2 + $0x760] sm:$0xff]  ;;  %v261_v52 = vld [vmem:[#allocation2 + $0x730] sm:$0xff] }
  0x79   :  { %825 = vmatprep.subr.bf16.mxu1 %v824_v55  ;;  %v284_v55 = vld [vmem:[#allocation2 + $0x7e8] sm:$0xff]  ;;  %v782_v58 = vpack.c.bf16 %v267_v51, %v259_v50  ;;  %v846_v59 = vpack.c.bf16 %v269_v16, %v261_v52 }
  0x7a   :  { %v784_v60 = vpack.c.bf16 %v284_v55, %v276_v54 }
  0x7b   :  { %763 = vmatpush1.bf16.msra.mxu0 %v762_v61  ;;  %v275_v61 = vld [vmem:[#allocation2 + $0x7a0] sm:$0xff] }
  0x7c   :  { %827 = vmatpush1.bf16.msra.mxu1 %v826_v62  ;;  %765 = vmatprep.subr.bf16.mxu0 %v764_v63  ;;  %v283_v62 = vld [vmem:[#allocation2 + $0x7e0] sm:$0xff]  ;;  %v848_v63 = vpack.c.bf16 %v286_v57, %v278_v56 }
  0x7d   :  { %829 = vmatprep.subr.bf16.mxu1 %v828_v3  ;;  %v786_v2 = vpack.c.bf16 %v283_v62, %v275_v61  ;;  %v850_v3 = vpack.c.bf16 %v285_v1, %v277_v0 }
  0x7f   :  { %767 = vmatpush1.bf16.msra.mxu0 %v766_v9 }
  0x80   :  { %831 = vmatpush1.bf16.msra.mxu1 %v830_v10  ;;  %769 = vmatprep.subr.bf16.mxu0 %v768_v11 }
  0x81   :  { %833 = vmatprep.subr.bf16.mxu1 %v832_v17 }
  0x83   :  { %771 = vmatpush1.bf16.msra.mxu0 %v770_v23 }
  0x84   :  { %835 = vmatpush1.bf16.msra.mxu1 %v834_v24  ;;  %773 = vmatprep.subr.bf16.mxu0 %v772_v25 }
  0x85   :  { %837 = vmatprep.subr.bf16.mxu1 %v836_v29 }
  0x87   :  { %775 = vmatpush1.bf16.msra.mxu0 %v774_v35 }
  0x88   :  { %839 = vmatpush1.bf16.msra.mxu1 %v838_v36  ;;  %777 = vmatprep.subr.bf16.mxu0 %v776_v37 }
  0x89   :  { %841 = vmatprep.subr.bf16.mxu1 %v840_v41 }
  0x8b   :  { %779 = vmatpush1.bf16.msra.mxu0 %v778_v47 }
  0x8c   :  { %843 = vmatpush1.bf16.msra.mxu1 %v842_v48  ;;  %781 = vmatprep.subr.bf16.mxu0 %v780_v49 }
  0x8d   :  { %845 = vmatprep.subr.bf16.mxu1 %v844_v53 }
  0x8f   :  { %783 = vmatpush1.bf16.msra.mxu0 %v782_v58 }
  0x90   :  { %847 = vmatpush1.bf16.msra.mxu1 %v846_v59  ;;  %785 = vmatprep.subr.bf16.mxu0 %v784_v60 }
  0x91   :  { %849 = vmatprep.subr.bf16.mxu1 %v848_v63 }
  0x93   :  { %787 = vmatpush1.bf16.msra.mxu0 %v786_v2 }
  0x94   :  { %851 = vmatpush1.bf16.msra.mxu1 %v850_v3 }
  0x96   :  { %494 = vmatmul.mubr.f32.vlgmr.msra.gmra.mrb[2].mxu0 %v934_v15 }
  0x97   :  { %565 = vmatmul.mubr.f32.vlgmr.msra.gmra.mrb[2].mxu1 %v934_v15 }
 0x129   :  { %v353_v4 = vpop.f32.mrb[0].mxu0 }
 0x12a   :  { %571 = vst [vmem:[%s968_s2] sm:$0xff] %v353_v4  ;;  %v424_v5 = vpop.f32.mrb[0].mxu1  ;;  %v355_v6 = vpop.f32.mrb[1].mxu0 }
 0x12b   :  { %573 = vst [vmem:[%s969_s3] sm:$0xff] %v424_v5  ;;  %572 = vst [vmem:[%s968_s2 + $0x8] sm:$0xff] %v355_v6  ;;  %v426_v7 = vpop.f32.mrb[1].mxu1 }
 0x12c   :  { %574 = vst [vmem:[%s969_s3 + $0x8] sm:$0xff] %v426_v7 }
 0x169   :  { %v495_v15 = vpop.f32.mrb[2].mxu0 }
 0x16a   :  { %575 = vst [vmem:[%s970_s4] sm:$0xff] %v495_v15  ;;  %v566_v8 = vpop.f32.mrb[2].mxu1  ;;  %v497_v9 = vpop.f32.mrb[3].mxu0 }
 0x16b   :  { %577 = vst [vmem:[%s971_s5] sm:$0xff] %v566_v8  ;;  %576 = vst [vmem:[%s970_s4 + $0x8] sm:$0xff] %v497_v9  ;;  %v568_v10 = vpop.f32.mrb[3].mxu1 }
 0x16c   :  { %578 = vst [vmem:[%s971_s5 + $0x8] sm:$0xff] %v568_v10 }
 0x16d   :  { %595 = vsyncpa [#allocation3], 1 }

</bundles_post_ra>
